<compile_context>
chip_gen: v7x
topology: tpu7x:2x2x1
jax: 0.10.0
libtpu: 0.0.40
codegen_flags: <defaults>
</compile_context>

<pallas_src>
import math

import jax
import jax.numpy as jnp
from jax.experimental import pallas as pl
from jax.experimental.pallas import tpu as pltpu


def _make_concat_kernel(pack, d1, d2, single_store):
    """Kernel body for row-packed last-dim concat.

    Tiles seen by the kernel (all 2-D):
      x1_ref: (T, pack*d1)        pack logical rows of input1 per physical row
      x2_ref: (T, pack*d2)
      o_ref : (T, pack*(d1+d2))   interleaved [x1_row | x2_row] * pack
    """
    dout = d1 + d2

    if single_store:
        def kernel(x1_ref, x2_ref, o_ref):
            parts = []
            for j in range(pack):                       # static unroll
                parts.append(x1_ref[:, j * d1:(j + 1) * d1])
                parts.append(x2_ref[:, j * d2:(j + 1) * d2])
            # Build the whole tile in registers, issue ONE full-width
            # (lane-dense, unmasked) store.
            o_ref[...] = jnp.concatenate(parts, axis=-1)
        return kernel

    def kernel(x1_ref, x2_ref, o_ref):
        # Conservative variant: per-slice stores (masked vst), same tiling /
        # packing / pipelining. Only used if the concatenate lowering fails.
        for j in range(pack):
            o_ref[:, j * dout:j * dout + d1] = x1_ref[:, j * d1:(j + 1) * d1]
            o_ref[:, j * dout + d1:(j + 1) * dout] = x2_ref[:, j * d2:(j + 1) * d2]
    return kernel


def _concat_last_dim_2d(x1, x2, block_rows=None, target_tile_bytes=1 << 20):
    """(rows, d1) ++ (rows, d2) -> (rows, d1+d2) along the last dim."""
    rows, d1 = x1.shape
    rows2, d2 = x2.shape
    assert rows == rows2 and x1.dtype == x2.dtype
    dout = d1 + d2
    dtype = x1.dtype
    itemsize = dtype.itemsize

    # ---- lane-dense row packing -------------------------------------------
    # If the concatenated feature dim is narrower than 128 lanes, pack `pack`
    # consecutive logical rows per physical row so the output tile's last dim
    # is a multiple of 128. This is a metadata-only, row-major-preserving
    # reshape on the wrapper side; the interleave happens inside the kernel.
    pack = 1
    if dout < 128:
        cand = 128 // math.gcd(128, dout)
        if cand > 1 and rows % cand == 0:
            pack = cand
    R = rows // pack
    D1, D2, DO = pack * d1, pack * d2, pack * dout

    x1v = x1.reshape(R, D1)
    x2v = x2.reshape(R, D2)

    # ---- row-tile sizing ----------------------------------------------------
    # ~0.5-2 MiB output tiles: big enough to hide the ~0.35 us per-grid-step
    # overhead and run near HBM roofline, small enough that double-buffered
    # in+in+out tiles (~4x tile bytes) stay far below scoped-VMEM defaults on
    # every generation (16 MiB v5e, 32 MiB v6e/v7x, v7x's 64 MiB physical).
    if block_rows is None:
        block_rows = max(1, target_tile_bytes // max(1, DO * itemsize))
    if block_rows >= R:
        bt = R                                   # single row-block (== full dim, OK)
    else:
        bt = min(R, max(8, (block_rows // 8) * 8))   # keep sublane multiple of 8

    grid = (pl.cdiv(R, bt),)

    cost = pl.CostEstimate(
        flops=0,
        transcendentals=0,
        bytes_accessed=int(2 * rows * dout * itemsize),  # read x1+x2, write out
    )

    def run(single_store):
        return pl.pallas_call(
            _make_concat_kernel(pack, d1, d2, single_store),
            out_shape=jax.ShapeDtypeStruct((R, DO), dtype),
            grid=grid,
            in_specs=[
                pl.BlockSpec((bt, D1), lambda i: (i, 0)),
                pl.BlockSpec((bt, D2), lambda i: (i, 0)),
            ],
            out_specs=pl.BlockSpec((bt, DO), lambda i: (i, 0)),
            compiler_params=pltpu.CompilerParams(
                dimension_semantics=("parallel",),   # shard row copy across TCs (v7x)
            ),
            cost_estimate=cost,
        )(x1v, x2v)

    try:
        out = run(single_store=True)
    except Exception:
        # Fallback for environments where minor-dim jnp.concatenate does not
        # lower: identical tiling/packing/pipelining, per-slice stores.
        out = run(single_store=False)

    return out.reshape(rows, dout)


def concat(input1, input2, dim=-1, *, block_rows=None):
    """torch.cat([input1, input2], dim=dim) implemented with a Pallas TPU kernel."""
    input1 = jnp.asarray(input1)
    input2 = jnp.asarray(input2)
    assert input1.dtype == input2.dtype, "dtypes must match"
    assert input1.ndim == input2.ndim, "ranks must match"
    ndim = input1.ndim
    axis = dim % ndim
    for ax in range(ndim):
        if ax != axis:
            assert input1.shape[ax] == input2.shape[ax], "non-concat dims must match"

    lead = input1.shape[:axis]
    trail = input1.shape[axis + 1:]
    rows = math.prod(lead)          # == 1 when axis == 0
    tail = math.prod(trail)         # == 1 when axis == ndim - 1
    d1 = input1.shape[axis] * tail
    d2 = input2.shape[axis] * tail
    out_shape = lead + (input1.shape[axis] + input2.shape[axis],) + trail

    # Row-major flattening: concat along `axis` is exactly a last-dim concat of
    # the (rows, axis_size * tail) contiguous views.
    x1 = input1.reshape(rows, d1)
    x2 = input2.reshape(rows, d2)
    out2d = _concat_last_dim_2d(x1, x2, block_rows=block_rows)
    return out2d.reshape(out_shape)


if __name__ == "__main__":
    key = jax.random.PRNGKey(0)
    k1, k2, k3, k4, k5, k6 = jax.random.split(key, 6)

    # 1) The module's default use: NCHW tensors, concat along the last dim.
    #    (d1+d2 = 32 < 128 -> lane-dense packing, pack=4, full-width stores.)
    x1 = jax.random.normal(k1, (2, 4, 16, 16), dtype=jnp.float32)
    x2 = jax.random.normal(k2, (2, 4, 16, 16), dtype=jnp.float32)
    out = jax.block_until_ready(concat(x1, x2, dim=-1))
    ref = jnp.concatenate([x1, x2], axis=-1)
    assert out.shape == (2, 4, 16, 32) and out.dtype == x1.dtype
    assert jnp.array_equal(out, ref)

    # 2) Unequal feature dims + multi-step pipelined (parallel) grid.
    y1 = jax.random.normal(k3, (4, 8, 32, 16), dtype=jnp.float32)
    y2 = jax.random.normal(k4, (4, 8, 32, 48), dtype=jnp.float32)
    out = jax.block_until_ready(concat(y1, y2, dim=-1, block_rows=64))
    ref = jnp.concatenate([y1, y2], axis=-1)
    assert out.shape == ref.shape and jnp.array_equal(out, ref)

    # 3) Non-default dim (channel concat): exercises the general-dim reduction
    #    and the wide-feature (no-packing) path.
    z1 = jax.random.normal(k5, (2, 3, 8, 16), dtype=jnp.float32)
    z2 = jax.random.normal(k6, (2, 5, 8, 16), dtype=jnp.float32)
    out = jax.block_until_ready(concat(z1, z2, dim=1))
    ref = jnp.concatenate([z1, z2], axis=1)
    assert out.shape == ref.shape and jnp.array_equal(out, ref)

    print("KERNEL_OK")
</pallas_src>

<mosaic_0001>
module attributes {stable_mosaic.version = 11 : i64} {
  func.func @kernel(%arg0: i32, %arg1: memref<32x64xf32, #tpu.memory_space<vmem>>, %arg2: memref<32x64xf32, #tpu.memory_space<vmem>>, %arg3: memref<32x128xf32, #tpu.memory_space<vmem>>) attributes {dimension_semantics = [#tpu.dimension_semantics<parallel>], iteration_bounds = array<i64: 1>, scalar_prefetch = 0 : i64, scratch_operands = 0 : i64, tpu.core_type = #tpu.core_type<tc>, window_params = [{transform_indices = @transform_0, window_bounds = array<i64: 32, 64>}, {transform_indices = @transform_1, window_bounds = array<i64: 32, 64>}, {transform_indices = @transform_2, window_bounds = array<i64: 32, 128>}]} {
    %c0 = arith.constant 0 : index
    %c0_0 = arith.constant 0 : index
    %0 = vector.load %arg1[%c0, %c0_0] : memref<32x64xf32, #tpu.memory_space<vmem>>, vector<32x16xf32>
    %c0_1 = arith.constant 0 : index
    %c0_2 = arith.constant 0 : index
    %1 = vector.load %arg2[%c0_1, %c0_2] : memref<32x64xf32, #tpu.memory_space<vmem>>, vector<32x16xf32>
    %c0_3 = arith.constant 0 : index
    %c16 = arith.constant 16 : index
    %2 = vector.load %arg1[%c0_3, %c16] : memref<32x64xf32, #tpu.memory_space<vmem>>, vector<32x16xf32>
    %c0_4 = arith.constant 0 : index
    %c16_5 = arith.constant 16 : index
    %3 = vector.load %arg2[%c0_4, %c16_5] : memref<32x64xf32, #tpu.memory_space<vmem>>, vector<32x16xf32>
    %c0_6 = arith.constant 0 : index
    %c32 = arith.constant 32 : index
    %4 = vector.load %arg1[%c0_6, %c32] : memref<32x64xf32, #tpu.memory_space<vmem>>, vector<32x16xf32>
    %c0_7 = arith.constant 0 : index
    %c32_8 = arith.constant 32 : index
    %5 = vector.load %arg2[%c0_7, %c32_8] : memref<32x64xf32, #tpu.memory_space<vmem>>, vector<32x16xf32>
    %c0_9 = arith.constant 0 : index
    %c48 = arith.constant 48 : index
    %6 = vector.load %arg1[%c0_9, %c48] : memref<32x64xf32, #tpu.memory_space<vmem>>, vector<32x16xf32>
    %c0_10 = arith.constant 0 : index
    %c48_11 = arith.constant 48 : index
    %7 = vector.load %arg2[%c0_10, %c48_11] : memref<32x64xf32, #tpu.memory_space<vmem>>, vector<32x16xf32>
    %8 = tpu.concatenate %0, %1, %2, %3, %4, %5, %6, %7 in 1 : vector<32x16xf32>, vector<32x16xf32>, vector<32x16xf32>, vector<32x16xf32>, vector<32x16xf32>, vector<32x16xf32>, vector<32x16xf32>, vector<32x16xf32> -> vector<32x128xf32>
    %c0_12 = arith.constant 0 : index
    %c0_13 = arith.constant 0 : index
    %9 = vector.load %arg3[%c0_12, %c0_13] : memref<32x128xf32, #tpu.memory_space<vmem>>, vector<32x128xf32>
    tpu.vector_store %arg3[%c0_12, %c0_13], %8 {strides = array<i32>} : memref<32x128xf32, #tpu.memory_space<vmem>>, vector<32x128xf32>,
    return
  }
  func.func @transform_0(%arg0: i32) -> (i32, i32) {
    %c0_i32 = arith.constant 0 : i32
    %c0_i32_0 = arith.constant 0 : i32
    return %arg0, %c0_i32 : i32, i32
  }
  func.func @transform_1(%arg0: i32) -> (i32, i32) {
    %c0_i32 = arith.constant 0 : i32
    %c0_i32_0 = arith.constant 0 : i32
    return %arg0, %c0_i32 : i32, i32
  }
  func.func @transform_2(%arg0: i32) -> (i32, i32) {
    %c0_i32 = arith.constant 0 : i32
    %c0_i32_0 = arith.constant 0 : i32
    return %arg0, %c0_i32 : i32, i32
  }
}

module attributes {stable_mosaic.version = 11 : i64} {
  func.func @kernel(%arg0: i32, %arg1: memref<32x64xf32, #tpu.memory_space<vmem>>, %arg2: memref<32x64xf32, #tpu.memory_space<vmem>>, %arg3: memref<32x128xf32, #tpu.memory_space<vmem>>) attributes {dimension_semantics = [#tpu.dimension_semantics<parallel>], iteration_bounds = array<i64: 1>, scalar_prefetch = 0 : i64, scratch_operands = 0 : i64, tpu.core_type = #tpu.core_type<tc>, window_params = [{transform_indices = @transform_0, window_bounds = array<i64: 32, 64>}, {transform_indices = @transform_1, window_bounds = array<i64: 32, 64>}, {transform_indices = @transform_2, window_bounds = array<i64: 32, 128>}]} {
    %c0 = arith.constant 0 : index
    %c0_0 = arith.constant 0 : index
    %0 = vector.load %arg1[%c0, %c0_0] : memref<32x64xf32, #tpu.memory_space<vmem>>, vector<32x16xf32>
    %c0_1 = arith.constant 0 : index
    %c0_2 = arith.constant 0 : index
    %1 = vector.load %arg3[%c0_1, %c0_2] : memref<32x128xf32, #tpu.memory_space<vmem>>, vector<32x16xf32>
    tpu.vector_store %arg3[%c0_1, %c0_2], %0 {strides = array<i32>} : memref<32x128xf32, #tpu.memory_space<vmem>>, vector<32x16xf32>,
    %c0_3 = arith.constant 0 : index
    %c0_4 = arith.constant 0 : index
    %2 = vector.load %arg2[%c0_3, %c0_4] : memref<32x64xf32, #tpu.memory_space<vmem>>, vector<32x16xf32>
    %c0_5 = arith.constant 0 : index
    %c16 = arith.constant 16 : index
    %3 = vector.load %arg3[%c0_5, %c16] : memref<32x128xf32, #tpu.memory_space<vmem>>, vector<32x16xf32>
    tpu.vector_store %arg3[%c0_5, %c16], %2 {strides = array<i32>} : memref<32x128xf32, #tpu.memory_space<vmem>>, vector<32x16xf32>,
    %c0_6 = arith.constant 0 : index
    %c16_7 = arith.constant 16 : index
    %4 = vector.load %arg1[%c0_6, %c16_7] : memref<32x64xf32, #tpu.memory_space<vmem>>, vector<32x16xf32>
    %c0_8 = arith.constant 0 : index
    %c32 = arith.constant 32 : index
    %5 = vector.load %arg3[%c0_8, %c32] : memref<32x128xf32, #tpu.memory_space<vmem>>, vector<32x16xf32>
    tpu.vector_store %arg3[%c0_8, %c32], %4 {strides = array<i32>} : memref<32x128xf32, #tpu.memory_space<vmem>>, vector<32x16xf32>,
    %c0_9 = arith.constant 0 : index
    %c16_10 = arith.constant 16 : index
    %6 = vector.load %arg2[%c0_9, %c16_10] : memref<32x64xf32, #tpu.memory_space<vmem>>, vector<32x16xf32>
    %c0_11 = arith.constant 0 : index
    %c48 = arith.constant 48 : index
    %7 = vector.load %arg3[%c0_11, %c48] : memref<32x128xf32, #tpu.memory_space<vmem>>, vector<32x16xf32>
    tpu.vector_store %arg3[%c0_11, %c48], %6 {strides = array<i32>} : memref<32x128xf32, #tpu.memory_space<vmem>>, vector<32x16xf32>,
    %c0_12 = arith.constant 0 : index
    %c32_13 = arith.constant 32 : index
    %8 = vector.load %arg1[%c0_12, %c32_13] : memref<32x64xf32, #tpu.memory_space<vmem>>, vector<32x16xf32>
    %c0_14 = arith.constant 0 : index
    %c64 = arith.constant 64 : index
    %9 = vector.load %arg3[%c0_14, %c64] : memref<32x128xf32, #tpu.memory_space<vmem>>, vector<32x16xf32>
    tpu.vector_store %arg3[%c0_14, %c64], %8 {strides = array<i32>} : memref<32x128xf32, #tpu.memory_space<vmem>>, vector<32x16xf32>,
    %c0_15 = arith.constant 0 : index
    %c32_16 = arith.constant 32 : index
    %10 = vector.load %arg2[%c0_15, %c32_16] : memref<32x64xf32, #tpu.memory_space<vmem>>, vector<32x16xf32>
    %c0_17 = arith.constant 0 : index
    %c80 = arith.constant 80 : index
    %11 = vector.load %arg3[%c0_17, %c80] : memref<32x128xf32, #tpu.memory_space<vmem>>, vector<32x16xf32>
    tpu.vector_store %arg3[%c0_17, %c80], %10 {strides = array<i32>} : memref<32x128xf32, #tpu.memory_space<vmem>>, vector<32x16xf32>,
    %c0_18 = arith.constant 0 : index
    %c48_19 = arith.constant 48 : index
    %12 = vector.load %arg1[%c0_18, %c48_19] : memref<32x64xf32, #tpu.memory_space<vmem>>, vector<32x16xf32>
    %c0_20 = arith.constant 0 : index
    %c96 = arith.constant 96 : index
    %13 = vector.load %arg3[%c0_20, %c96] : memref<32x128xf32, #tpu.memory_space<vmem>>, vector<32x16xf32>
    tpu.vector_store %arg3[%c0_20, %c96], %12 {strides = array<i32>} : memref<32x128xf32, #tpu.memory_space<vmem>>, vector<32x16xf32>,
    %c0_21 = arith.constant 0 : index
    %c48_22 = arith.constant 48 : index
    %14 = vector.load %arg2[%c0_21, %c48_22] : memref<32x64xf32, #tpu.memory_space<vmem>>, vector<32x16xf32>
    %c0_23 = arith.constant 0 : index
    %c112 = arith.constant 112 : index
    %15 = vector.load %arg3[%c0_23, %c112] : memref<32x128xf32, #tpu.memory_space<vmem>>, vector<32x16xf32>
    tpu.vector_store %arg3[%c0_23, %c112], %14 {strides = array<i32>} : memref<32x128xf32, #tpu.memory_space<vmem>>, vector<32x16xf32>,
    return
  }
  func.func @transform_0(%arg0: i32) -> (i32, i32) {
    %c0_i32 = arith.constant 0 : i32
    %c0_i32_0 = arith.constant 0 : i32
    return %arg0, %c0_i32 : i32, i32
  }
  func.func @transform_1(%arg0: i32) -> (i32, i32) {
    %c0_i32 = arith.constant 0 : i32
    %c0_i32_0 = arith.constant 0 : i32
    return %arg0, %c0_i32 : i32, i32
  }
  func.func @transform_2(%arg0: i32) -> (i32, i32) {
    %c0_i32 = arith.constant 0 : i32
    %c0_i32_0 = arith.constant 0 : i32
    return %arg0, %c0_i32 : i32, i32
  }
}

</mosaic_0001>

<bundles_post_ra>
// kernel: tpu_custom_call.1
= control target key start
LH: loop header
LB: loop body
LE: loop exit
PB: predicated region body
PF: predicated region fallthrough
CT: control target
= control target key end

     0   :  { %7 = vsyncpa [#allocation3], 0  ;;  %s387_s0 = inlined_call_operand.hbm [shape: f32[32,64], index: 0, kind: input, shape index: {}]   ;;  %s388_s1 = inlined_call_operand.hbm [shape: f32[32,64], index: 1, kind: input, shape index: {}]   ;;  %s389_s2 = inlined_call_operand.hbm [shape: f32[32,128], index: 2, kind: output, shape index: {}]  }
   0x1   :  { %8 = vsyncpa [#allocation6], 0 }
   0x2   :  { %9 = vsyncpa [#allocation4], 0  ;;  %s278_s9 = smov [#allocation2]   ;;  %s206_s13 = scalar_lea.hbm %s387_s0, 512 }
   0x3   :  { %s15_s10 = sshll.u32 %s278_s9, 4  ;;  %p207_p0 = scmp.ne.s32.totalorder %s387_s0, %s206_s13  ;;  %s16_s10 = int_to_ptr.vmem [resolvable:$true] %s15_s10 }
   0x4   :  { %p210_p1 = scmp.lt.u32.totalorder %s206_s13, %s387_s0 }
   0x6   :  { %p212_p2 = pnand %p210_p1, %p207_p0 }
   0x8   :  { %215 = shalt.err (!%p212_p2)
}
   0x9   :  { %s216_s18 = scalar_lea.vmem %s16_s10, 512  ;;  %p221_p4 = scmp.lt.s32.totalorder %s16_s10, %s16_s10 }
   0xa   :  { %p217_p3 = scmp.ne.s32.totalorder %s16_s10, %s216_s18  ;;  %p222_p5 = scmp.lt.s32.totalorder %s216_s18, %s216_s18 }
   0xc   :  { %p223_p6 = por %p222_p5, %p221_p4 }
   0xe   :  { %p224_p7 = pnand %p223_p6, %p217_p3 }
  0x10   :  { %227 = shalt.err (!%p224_p7)
}
  0x11   :  { %s279_s19 = smov 128   ;;  %s280_s20 = smov 8  }
  0x12   :  { %21 = dma.hbm_to_vmem [thread:$0]  %s387_s0, 512, %s16_s10, [#allocation3], %s279_s19, %s279_s19, %s280_s20  }
  0x13   :  { %s281_s23 = smov [#allocation5]   ;;  %s228_s27 = scalar_lea.hbm %s388_s1, 512 }
  0x14   :  { %s27_s24 = sshll.u32 %s281_s23, 4  ;;  %p229_p8 = scmp.ne.s32.totalorder %s388_s1, %s228_s27  ;;  %s28_s24 = int_to_ptr.vmem [resolvable:$true] %s27_s24 }
  0x15   :  { %p232_p9 = scmp.lt.u32.totalorder %s228_s27, %s388_s1 }
  0x17   :  { %p234_p10 = pnand %p232_p9, %p229_p8 }
  0x19   :  { %237 = shalt.err (!%p234_p10)
}
  0x1a   :  { %s238_s4 = scalar_lea.vmem %s28_s24, 512  ;;  %p243_p12 = scmp.lt.s32.totalorder %s28_s24, %s28_s24 }
  0x1b   :  { %p239_p11 = scmp.ne.s32.totalorder %s28_s24, %s238_s4  ;;  %p244_p13 = scmp.lt.s32.totalorder %s238_s4, %s238_s4 }
  0x1d   :  { %p245_p0 = por %p244_p13, %p243_p12 }
  0x1f   :  { %p246_p1 = pnand %p245_p0, %p239_p11 }
  0x21   :  { %249 = shalt.err (!%p246_p1)
}
  0x22   :  { %33 = dma.hbm_to_vmem [thread:$0]  %s388_s1, 512, %s28_s24, [#allocation6], %s279_s19, %s279_s19, %s280_s20  }
  0x23   :  { %272 = dma.done.wait [#allocation3], 512  }
  0x24   :  { %273 = vsyncadd [#allocation3], 4294966784 }
  0x25   :  { %274 = dma.done.wait [#allocation6], 512  }
  0x26   :  { %275 = vsyncadd [#allocation6], 4294966784  ;;  %v46_v0 = vld [vmem:[#allocation5 + $0x10] sm:$0xff]  ;;  %v44_v1 = vld [vmem:[#allocation5] sm:$0xff]  ;;  %s282_s6 = smov 16   ;;  %s283_s1 = smov 32  }
  0x27   :  { %56 = vrot.lane.b32.xlu1 %v46_v0, %s282_s6  ;;  %52 = vrot.lane.b32.xlu0 %v44_v1, %s282_s6  ;;  %v47_v2 = vld [vmem:[#allocation5 + $0x18] sm:$0xff]  ;;  %v45_v3 = vld [vmem:[#allocation5 + $0x8] sm:$0xff]  ;;  %v40_v5 = vld [vmem:[#allocation2] sm:$0xff]  ;;  %s284_s7 = smov 48   ;;  %s285_s8 = smov 64   ;;  %vm140_vm0 = vcmask 130048  }
  0x28   :  { %v41_v4 = vld [vmem:[#allocation2 + $0x8] sm:$0xff]  ;;  %v332_v6 = vld [vmem:[#allocation2 + $0x18] sm:$0xff]  ;;  %v334_v7 = vld [vmem:[#allocation2 + $0x10] sm:$0xff]  ;;  %vm145_vm1 = vcmask 261120   ;;  %vm150_vm2 = vcmask 392192   ;;  %vm155_vm3 = vcmask 523264  }
  0x29   :  { %vm160_vm4 = vcmask 654336   ;;  %vm165_vm5 = vcmask 785408   ;;  %vm170_vm6 = vcmask 916480   ;;  %s286_s9 = smov [#allocation7]  }
  0x2a   :  { %s184_s10 = sshll.u32 %s286_s9, 4  ;;  %s185_s10 = int_to_ptr.vmem [resolvable:$true] %s184_s10 }
  0x2b   :  { %58 = vrot.lane.b32.xlu1 %v47_v2, %s282_s6  ;;  %54 = vrot.lane.b32.xlu0 %v45_v3, %s282_s6  ;;  %s250_s11 = scalar_lea.vmem %s185_s10, 512  ;;  %p255_p3 = scmp.lt.s32.totalorder %s185_s10, %s185_s10 }
  0x2c   :  { %p251_p2 = scmp.ne.s32.totalorder %s185_s10, %s250_s11  ;;  %p256_p4 = scmp.lt.s32.totalorder %s250_s11, %s250_s11 }
  0x2e   :  { %p257_p5 = por %p256_p4, %p255_p3 }
  0x2f   :  { %70 = vrot.lane.b32.xlu1 %v41_v4, %s282_s6  ;;  %68 = vrot.lane.b32.xlu0 %v40_v5, %s282_s6 }
  0x30   :  { %p258_p6 = pnand %p257_p5, %p251_p2 }
  0x33   :  { %74 = vrot.lane.b32.xlu1 %v332_v6, %s282_s6  ;;  %72 = vrot.lane.b32.xlu0 %v334_v7, %s282_s6 }
  0x37   :  { %82 = vrot.lane.b32.xlu1 %v45_v3, %s283_s1  ;;  %80 = vrot.lane.b32.xlu0 %v44_v1, %s283_s1 }
  0x3b   :  { %86 = vrot.lane.b32.xlu1 %v47_v2, %s283_s1  ;;  %84 = vrot.lane.b32.xlu0 %v46_v0, %s283_s1 }
  0x3f   :  { %94 = vrot.lane.b32.xlu1 %v41_v4, %s283_s1  ;;  %92 = vrot.lane.b32.xlu0 %v40_v5, %s283_s1 }
  0x43   :  { %98 = vrot.lane.b32.xlu1 %v332_v6, %s283_s1  ;;  %96 = vrot.lane.b32.xlu0 %v334_v7, %s283_s1 }
  0x47   :  { %106 = vrot.lane.b32.xlu1 %v45_v3, %s284_s7  ;;  %104 = vrot.lane.b32.xlu0 %v44_v1, %s284_s7 }
  0x4b   :  { %110 = vrot.lane.b32.xlu1 %v47_v2, %s284_s7  ;;  %108 = vrot.lane.b32.xlu0 %v46_v0, %s284_s7 }
  0x4f   :  { %118 = vrot.lane.b32.xlu1 %v41_v4, %s284_s7  ;;  %116 = vrot.lane.b32.xlu0 %v40_v5, %s284_s7 }
  0x53   :  { %122 = vrot.lane.b32.xlu1 %v332_v6, %s284_s7  ;;  %120 = vrot.lane.b32.xlu0 %v334_v7, %s284_s7 }
  0x57   :  { %130 = vrot.lane.b32.xlu1 %v45_v3, %s285_s8  ;;  %128 = vrot.lane.b32.xlu0 %v44_v1, %s285_s8 }
  0x5b   :  { %134 = vrot.lane.b32.xlu1 %v47_v2, %s285_s8  ;;  %132 = vrot.lane.b32.xlu0 %v46_v0, %s285_s8 }
  0x99   :  { %v57_v8 = vpop.permute.xlu1 %56  ;;  %v53_v9 = vpop.permute.xlu0 %52 }
  0x9a   :  { %v141_v30 = vsel %vm140_vm0, %v40_v5, %v53_v9  ;;  %v143_v40 = vsel %vm140_vm0, %v334_v7, %v57_v8 }
  0x9d   :  { %v59_v10 = vpop.permute.xlu1 %58  ;;  %v55_v11 = vpop.permute.xlu0 %54 }
  0x9e   :  { %v142_v31 = vsel %vm140_vm0, %v41_v4, %v55_v11  ;;  %v144_v41 = vsel %vm140_vm0, %v332_v6, %v59_v10 }
  0xa1   :  { %v71_v12 = vpop.permute.xlu1 %70  ;;  %v69_v13 = vpop.permute.xlu0 %68 }
  0xa2   :  { %v147_v32 = vsel %vm145_vm1, %v142_v31, %v71_v12  ;;  %v146_v33 = vsel %vm145_vm1, %v141_v30, %v69_v13 }
  0xa5   :  { %v75_v14 = vpop.permute.xlu1 %74  ;;  %v73_v15 = vpop.permute.xlu0 %72 }
  0xa6   :  { %v149_v44 = vsel %vm145_vm1, %v144_v41, %v75_v14  ;;  %v148_v45 = vsel %vm145_vm1, %v143_v40, %v73_v15 }
  0xa9   :  { %v83_v16 = vpop.permute.xlu1 %82  ;;  %v81_v17 = vpop.permute.xlu0 %80 }
  0xaa   :  { %v152_v36 = vsel %vm150_vm2, %v147_v32, %v83_v16  ;;  %v151_v37 = vsel %vm150_vm2, %v146_v33, %v81_v17 }
  0xad   :  { %v87_v18 = vpop.permute.xlu1 %86  ;;  %v85_v19 = vpop.permute.xlu0 %84 }
  0xae   :  { %v154_v50 = vsel %vm150_vm2, %v149_v44, %v87_v18  ;;  %v153_v51 = vsel %vm150_vm2, %v148_v45, %v85_v19 }
  0xb1   :  { %v95_v20 = vpop.permute.xlu1 %94  ;;  %v93_v21 = vpop.permute.xlu0 %92 }
  0xb2   :  { %v157_v38 = vsel %vm155_vm3, %v152_v36, %v95_v20  ;;  %v156_v39 = vsel %vm155_vm3, %v151_v37, %v93_v21 }
  0xb5   :  { %v99_v22 = vpop.permute.xlu1 %98  ;;  %v97_v23 = vpop.permute.xlu0 %96 }
  0xb6   :  { %v159_v54 = vsel %vm155_vm3, %v154_v50, %v99_v22  ;;  %v158_v55 = vsel %vm155_vm3, %v153_v51, %v97_v23 }
  0xb9   :  { %v107_v24 = vpop.permute.xlu1 %106  ;;  %v105_v25 = vpop.permute.xlu0 %104 }
  0xba   :  { %v162_v42 = vsel %vm160_vm4, %v157_v38, %v107_v24  ;;  %v161_v43 = vsel %vm160_vm4, %v156_v39, %v105_v25 }
  0xbd   :  { %v111_v26 = vpop.permute.xlu1 %110  ;;  %v109_v27 = vpop.permute.xlu0 %108 }
  0xbe   :  { %v164_v56 = vsel %vm160_vm4, %v159_v54, %v111_v26  ;;  %v163_v57 = vsel %vm160_vm4, %v158_v55, %v109_v27 }
  0xc1   :  { %v119_v28 = vpop.permute.xlu1 %118  ;;  %v117_v29 = vpop.permute.xlu0 %116 }
  0xc2   :  { %v167_v46 = vsel %vm165_vm5, %v162_v42, %v119_v28  ;;  %v166_v47 = vsel %vm165_vm5, %v161_v43, %v117_v29 }
  0xc5   :  { %v123_v34 = vpop.permute.xlu1 %122  ;;  %v121_v35 = vpop.permute.xlu0 %120 }
  0xc6   :  { %v169_v58 = vsel %vm165_vm5, %v164_v56, %v123_v34  ;;  %v168_v59 = vsel %vm165_vm5, %v163_v57, %v121_v35 }
  0xc9   :  { %v131_v48 = vpop.permute.xlu1 %130  ;;  %v129_v49 = vpop.permute.xlu0 %128 }
  0xca   :  { %v172_v52 = vsel %vm170_vm6, %v167_v46, %v131_v48  ;;  %v171_v53 = vsel %vm170_vm6, %v166_v47, %v129_v49 }
  0xcb   :  { %176 = vst [vmem:[#allocation7 + $0x8] sm:$0xff] %v172_v52  ;;  %175 = vst [vmem:[#allocation7] sm:$0xff] %v171_v53 }
  0xcd   :  { %v135_v60 = vpop.permute.xlu1 %134  ;;  %v133_v61 = vpop.permute.xlu0 %132 }
  0xce   :  { %v174_v62 = vsel %vm170_vm6, %v169_v58, %v135_v60  ;;  %v173_v63 = vsel %vm170_vm6, %v168_v59, %v133_v61 }
  0xcf   :  { %178 = vst [vmem:[#allocation7 + $0x18] sm:$0xff] %v174_v62  ;;  %177 = vst [vmem:[#allocation7 + $0x10] sm:$0xff] %v173_v63 }
  0xd0   :  { %261 = shalt.err (!%p258_p6)
}
  0xd1   :  { %s262_s14 = scalar_lea.hbm %s389_s2, 512 }
  0xd2   :  { %p263_p7 = scmp.ne.s32.totalorder %s389_s2, %s262_s14  ;;  %p266_p8 = scmp.lt.u32.totalorder %s262_s14, %s389_s2 }
  0xd4   :  { %p268_p9 = pnand %p266_p8, %p263_p7 }
  0xd6   :  { %271 = shalt.err (!%p268_p9)
}
  0xd7   :  { %190 = dma.vmem_to_hbm [thread:$0]  %s185_s10, 512, %s389_s2, [#allocation4], %s279_s19, %s279_s19, %s280_s20  }
  0xd8   :  { %276 = dma.done.wait [#allocation4], 512  }
  0xd9   :  { %277 = vsyncadd [#allocation4], 4294966784 }
  0xda   :  { %194 = vsyncpa [#allocation3], 1 }
  0xdb   :  { %195 = vsyncpa [#allocation6], 1 }
  0xdc   :  { %196 = vsyncpa [#allocation4], 1 }

// kernel: tpu_custom_call.1
= control target key start
LH: loop header
LB: loop body
LE: loop exit
PB: predicated region body
PF: predicated region fallthrough
CT: control target
= control target key end

     0   :  { %7 = vsyncpa [#allocation3], 0  ;;  %s392_s0 = inlined_call_operand.hbm [shape: f32[32,64], index: 0, kind: input, shape index: {}]   ;;  %s393_s1 = inlined_call_operand.hbm [shape: f32[32,64], index: 1, kind: input, shape index: {}]   ;;  %s394_s2 = inlined_call_operand.hbm [shape: f32[32,128], index: 2, kind: output, shape index: {}]  }
   0x1   :  { %8 = vsyncpa [#allocation6], 0 }
   0x2   :  { %9 = vsyncpa [#allocation4], 0  ;;  %s323_s9 = smov [#allocation2]   ;;  %s251_s13 = scalar_lea.hbm %s392_s0, 512 }
   0x3   :  { %s15_s10 = sshll.u32 %s323_s9, 4  ;;  %p252_p0 = scmp.ne.s32.totalorder %s392_s0, %s251_s13  ;;  %s16_s10 = int_to_ptr.vmem [resolvable:$true] %s15_s10 }
   0x4   :  { %p255_p1 = scmp.lt.u32.totalorder %s251_s13, %s392_s0 }
   0x6   :  { %p257_p2 = pnand %p255_p1, %p252_p0 }
   0x8   :  { %260 = shalt.err (!%p257_p2)
}
   0x9   :  { %s261_s18 = scalar_lea.vmem %s16_s10, 512  ;;  %p266_p4 = scmp.lt.s32.totalorder %s16_s10, %s16_s10 }
   0xa   :  { %p262_p3 = scmp.ne.s32.totalorder %s16_s10, %s261_s18  ;;  %p267_p5 = scmp.lt.s32.totalorder %s261_s18, %s261_s18 }
   0xc   :  { %p268_p6 = por %p267_p5, %p266_p4 }
   0xe   :  { %p269_p7 = pnand %p268_p6, %p262_p3 }
  0x10   :  { %272 = shalt.err (!%p269_p7)
}
  0x11   :  { %s324_s19 = smov 128   ;;  %s325_s20 = smov 8  }
  0x12   :  { %21 = dma.hbm_to_vmem [thread:$0]  %s392_s0, 512, %s16_s10, [#allocation3], %s324_s19, %s324_s19, %s325_s20  }
  0x13   :  { %s326_s23 = smov [#allocation5]   ;;  %s273_s27 = scalar_lea.hbm %s393_s1, 512 }
  0x14   :  { %s27_s24 = sshll.u32 %s326_s23, 4  ;;  %p274_p8 = scmp.ne.s32.totalorder %s393_s1, %s273_s27  ;;  %s28_s24 = int_to_ptr.vmem [resolvable:$true] %s27_s24 }
  0x15   :  { %p277_p9 = scmp.lt.u32.totalorder %s273_s27, %s393_s1 }
  0x17   :  { %p279_p10 = pnand %p277_p9, %p274_p8 }
  0x19   :  { %282 = shalt.err (!%p279_p10)
}
  0x1a   :  { %s283_s4 = scalar_lea.vmem %s28_s24, 512  ;;  %p288_p12 = scmp.lt.s32.totalorder %s28_s24, %s28_s24 }
  0x1b   :  { %p284_p11 = scmp.ne.s32.totalorder %s28_s24, %s283_s4  ;;  %p289_p13 = scmp.lt.s32.totalorder %s283_s4, %s283_s4 }
  0x1d   :  { %p290_p0 = por %p289_p13, %p288_p12 }
  0x1f   :  { %p291_p1 = pnand %p290_p0, %p284_p11 }
  0x21   :  { %294 = shalt.err (!%p291_p1)
}
  0x22   :  { %33 = dma.hbm_to_vmem [thread:$0]  %s393_s1, 512, %s28_s24, [#allocation6], %s324_s19, %s324_s19, %s325_s20  }
  0x23   :  { %317 = dma.done.wait [#allocation3], 512  }
  0x24   :  { %318 = vsyncadd [#allocation3], 4294966784 }
  0x25   :  { %319 = dma.done.wait [#allocation6], 512  }
  0x26   :  { %320 = vsyncadd [#allocation6], 4294966784  ;;  %vm44_vm0 = vcmask 130048   ;;  %v51_v0 = vld [vmem:[#allocation5 + $0x10] sm:$0xff]  ;;  %v49_v1 = vld [vmem:[#allocation5] sm:$0xff]  ;;  %s327_s6 = smov 16  }
  0x27   :  { %61 = vrot.lane.b32.xlu1 %v51_v0, %s327_s6  ;;  %57 = vrot.lane.b32.xlu0 %v49_v1, %s327_s6  ;;  %v52_v2 = vld [vmem:[#allocation5 + $0x18] sm:$0xff]  ;;  %v75_v3 = vld [vmem:[#allocation2 + $0x8] sm:$0xff]  ;;  %v74_v4 = vld [vmem:[#allocation2] sm:$0xff]  ;;  %s328_s1 = smov 32   ;;  %s329_s7 = smov 48   ;;  %vm69_vm1 = vcmask 261248  }
  0x28   :  { %v50_v5 = vld [vmem:[#allocation5 + $0x8] sm:$0xff]  ;;  %v77_v6 = vld [vmem:[#allocation2 + $0x18] sm:$0xff]  ;;  %v76_v7 = vld [vmem:[#allocation2 + $0x10] sm:$0xff]  ;;  %45 = vst.msk [vmem:[#allocation7] sm:$0xff] %vm44_vm0, %v74_v4  ;;  %s330_s8 = smov 64   ;;  %vm94_vm2 = vcmask 392448  }
  0x29   :  { %46 = vst.msk [vmem:[#allocation7 + $0x8] sm:$0xff] %vm44_vm0, %v75_v3  ;;  %47 = vst.msk [vmem:[#allocation7 + $0x10] sm:$0xff] %vm44_vm0, %v76_v7  ;;  %vm119_vm3 = vcmask 523648   ;;  %vm144_vm4 = vcmask 654848   ;;  %vm169_vm5 = vcmask 786048   ;;  %vm194_vm6 = vcmask 917248  }
  0x2a   :  { %48 = vst.msk [vmem:[#allocation7 + $0x18] sm:$0xff] %vm44_vm0, %v77_v6  ;;  %vm219_vm7 = vcmask 1048448   ;;  %s331_s9 = smov [#allocation7]  }
  0x2b   :  { %63 = vrot.lane.b32.xlu1 %v52_v2, %s327_s6  ;;  %59 = vrot.lane.b32.xlu0 %v50_v5, %s327_s6  ;;  %s229_s10 = sshll.u32 %s331_s9, 4  ;;  %s230_s10 = int_to_ptr.vmem [resolvable:$true] %s229_s10 }
  0x2c   :  { %s295_s11 = scalar_lea.vmem %s230_s10, 512  ;;  %p300_p3 = scmp.lt.s32.totalorder %s230_s10, %s230_s10 }
  0x2d   :  { %p296_p2 = scmp.ne.s32.totalorder %s230_s10, %s295_s11  ;;  %p301_p4 = scmp.lt.s32.totalorder %s295_s11, %s295_s11 }
  0x2f   :  { %84 = vrot.lane.b32.xlu1 %v75_v3, %s327_s6  ;;  %82 = vrot.lane.b32.xlu0 %v74_v4, %s327_s6  ;;  %p302_p5 = por %p301_p4, %p300_p3 }
  0x31   :  { %p303_p6 = pnand %p302_p5, %p296_p2 }
  0x33   :  { %88 = vrot.lane.b32.xlu1 %v77_v6, %s327_s6  ;;  %86 = vrot.lane.b32.xlu0 %v76_v7, %s327_s6 }
  0x37   :  { %109 = vrot.lane.b32.xlu1 %v50_v5, %s328_s1  ;;  %107 = vrot.lane.b32.xlu0 %v49_v1, %s328_s1 }
  0x3b   :  { %113 = vrot.lane.b32.xlu1 %v52_v2, %s328_s1  ;;  %111 = vrot.lane.b32.xlu0 %v51_v0, %s328_s1 }
  0x3f   :  { %134 = vrot.lane.b32.xlu1 %v75_v3, %s328_s1  ;;  %132 = vrot.lane.b32.xlu0 %v74_v4, %s328_s1 }
  0x43   :  { %138 = vrot.lane.b32.xlu1 %v77_v6, %s328_s1  ;;  %136 = vrot.lane.b32.xlu0 %v76_v7, %s328_s1 }
  0x47   :  { %159 = vrot.lane.b32.xlu1 %v50_v5, %s329_s7  ;;  %157 = vrot.lane.b32.xlu0 %v49_v1, %s329_s7 }
  0x4b   :  { %163 = vrot.lane.b32.xlu1 %v52_v2, %s329_s7  ;;  %161 = vrot.lane.b32.xlu0 %v51_v0, %s329_s7 }
  0x4f   :  { %184 = vrot.lane.b32.xlu1 %v75_v3, %s329_s7  ;;  %182 = vrot.lane.b32.xlu0 %v74_v4, %s329_s7 }
  0x53   :  { %188 = vrot.lane.b32.xlu1 %v77_v6, %s329_s7  ;;  %186 = vrot.lane.b32.xlu0 %v76_v7, %s329_s7 }
  0x57   :  { %209 = vrot.lane.b32.xlu1 %v50_v5, %s330_s8  ;;  %207 = vrot.lane.b32.xlu0 %v49_v1, %s330_s8 }
  0x5b   :  { %213 = vrot.lane.b32.xlu1 %v52_v2, %s330_s8  ;;  %211 = vrot.lane.b32.xlu0 %v51_v0, %s330_s8 }
  0x99   :  { %v62_v8 = vpop.permute.xlu1 %61  ;;  %v58_v9 = vpop.permute.xlu0 %57 }
  0x9a   :  { %72 = vst.msk [vmem:[#allocation7 + $0x10] sm:$0xff] %vm69_vm1, %v62_v8  ;;  %70 = vst.msk [vmem:[#allocation7] sm:$0xff] %vm69_vm1, %v58_v9 }
  0x9d   :  { %v64_v10 = vpop.permute.xlu1 %63  ;;  %v60_v11 = vpop.permute.xlu0 %59 }
  0x9e   :  { %73 = vst.msk [vmem:[#allocation7 + $0x18] sm:$0xff] %vm69_vm1, %v64_v10  ;;  %71 = vst.msk [vmem:[#allocation7 + $0x8] sm:$0xff] %vm69_vm1, %v60_v11 }
  0xa1   :  { %v85_v12 = vpop.permute.xlu1 %84  ;;  %v83_v13 = vpop.permute.xlu0 %82 }
  0xa2   :  { %96 = vst.msk [vmem:[#allocation7 + $0x8] sm:$0xff] %vm94_vm2, %v85_v12  ;;  %95 = vst.msk [vmem:[#allocation7] sm:$0xff] %vm94_vm2, %v83_v13 }
  0xa5   :  { %v89_v14 = vpop.permute.xlu1 %88  ;;  %v87_v15 = vpop.permute.xlu0 %86 }
  0xa6   :  { %98 = vst.msk [vmem:[#allocation7 + $0x18] sm:$0xff] %vm94_vm2, %v89_v14  ;;  %97 = vst.msk [vmem:[#allocation7 + $0x10] sm:$0xff] %vm94_vm2, %v87_v15 }
  0xa9   :  { %v110_v16 = vpop.permute.xlu1 %109  ;;  %v108_v17 = vpop.permute.xlu0 %107 }
  0xaa   :  { %121 = vst.msk [vmem:[#allocation7 + $0x8] sm:$0xff] %vm119_vm3, %v110_v16  ;;  %120 = vst.msk [vmem:[#allocation7] sm:$0xff] %vm119_vm3, %v108_v17 }
  0xad   :  { %v114_v18 = vpop.permute.xlu1 %113  ;;  %v112_v19 = vpop.permute.xlu0 %111 }
  0xae   :  { %123 = vst.msk [vmem:[#allocation7 + $0x18] sm:$0xff] %vm119_vm3, %v114_v18  ;;  %122 = vst.msk [vmem:[#allocation7 + $0x10] sm:$0xff] %vm119_vm3, %v112_v19 }
  0xb1   :  { %v135_v20 = vpop.permute.xlu1 %134  ;;  %v133_v21 = vpop.permute.xlu0 %132 }
  0xb2   :  { %146 = vst.msk [vmem:[#allocation7 + $0x8] sm:$0xff] %vm144_vm4, %v135_v20  ;;  %145 = vst.msk [vmem:[#allocation7] sm:$0xff] %vm144_vm4, %v133_v21 }
  0xb5   :  { %v139_v22 = vpop.permute.xlu1 %138  ;;  %v137_v23 = vpop.permute.xlu0 %136 }
  0xb6   :  { %148 = vst.msk [vmem:[#allocation7 + $0x18] sm:$0xff] %vm144_vm4, %v139_v22  ;;  %147 = vst.msk [vmem:[#allocation7 + $0x10] sm:$0xff] %vm144_vm4, %v137_v23 }
  0xb9   :  { %v160_v24 = vpop.permute.xlu1 %159  ;;  %v158_v25 = vpop.permute.xlu0 %157 }
  0xba   :  { %171 = vst.msk [vmem:[#allocation7 + $0x8] sm:$0xff] %vm169_vm5, %v160_v24  ;;  %170 = vst.msk [vmem:[#allocation7] sm:$0xff] %vm169_vm5, %v158_v25 }
  0xbd   :  { %v164_v26 = vpop.permute.xlu1 %163  ;;  %v162_v27 = vpop.permute.xlu0 %161 }
  0xbe   :  { %173 = vst.msk [vmem:[#allocation7 + $0x18] sm:$0xff] %vm169_vm5, %v164_v26  ;;  %172 = vst.msk [vmem:[#allocation7 + $0x10] sm:$0xff] %vm169_vm5, %v162_v27 }
  0xc1   :  { %v185_v28 = vpop.permute.xlu1 %184  ;;  %v183_v29 = vpop.permute.xlu0 %182 }
  0xc2   :  { %196 = vst.msk [vmem:[#allocation7 + $0x8] sm:$0xff] %vm194_vm6, %v185_v28  ;;  %195 = vst.msk [vmem:[#allocation7] sm:$0xff] %vm194_vm6, %v183_v29 }
  0xc5   :  { %v189_v30 = vpop.permute.xlu1 %188  ;;  %v187_v31 = vpop.permute.xlu0 %186 }
  0xc6   :  { %198 = vst.msk [vmem:[#allocation7 + $0x18] sm:$0xff] %vm194_vm6, %v189_v30  ;;  %197 = vst.msk [vmem:[#allocation7 + $0x10] sm:$0xff] %vm194_vm6, %v187_v31 }
  0xc9   :  { %v210_v32 = vpop.permute.xlu1 %209  ;;  %v208_v33 = vpop.permute.xlu0 %207 }
  0xca   :  { %221 = vst.msk [vmem:[#allocation7 + $0x8] sm:$0xff] %vm219_vm7, %v210_v32  ;;  %220 = vst.msk [vmem:[#allocation7] sm:$0xff] %vm219_vm7, %v208_v33 }
  0xcd   :  { %v214_v34 = vpop.permute.xlu1 %213  ;;  %v212_v35 = vpop.permute.xlu0 %211 }
  0xce   :  { %223 = vst.msk [vmem:[#allocation7 + $0x18] sm:$0xff] %vm219_vm7, %v214_v34  ;;  %222 = vst.msk [vmem:[#allocation7 + $0x10] sm:$0xff] %vm219_vm7, %v212_v35 }
  0xcf   :  { %306 = shalt.err (!%p303_p6)
}
  0xd0   :  { %s307_s14 = scalar_lea.hbm %s394_s2, 512 }
  0xd1   :  { %p308_p7 = scmp.ne.s32.totalorder %s394_s2, %s307_s14  ;;  %p311_p8 = scmp.lt.u32.totalorder %s307_s14, %s394_s2 }
  0xd3   :  { %p313_p9 = pnand %p311_p8, %p308_p7 }
  0xd5   :  { %316 = shalt.err (!%p313_p9)
}
  0xd6   :  { %235 = dma.vmem_to_hbm [thread:$0]  %s230_s10, 512, %s394_s2, [#allocation4], %s324_s19, %s324_s19, %s325_s20  }
  0xd7   :  { %321 = dma.done.wait [#allocation4], 512  }
  0xd8   :  { %322 = vsyncadd [#allocation4], 4294966784 }
  0xd9   :  { %239 = vsyncpa [#allocation3], 1 }
  0xda   :  { %240 = vsyncpa [#allocation6], 1 }
  0xdb   :  { %241 = vsyncpa [#allocation4], 1 }

</bundles_post_ra>
